<compile_context>
chip_gen: v7x
topology: tpu7x:2x2x1
jax: 0.10.0
libtpu: 0.0.40
codegen_flags: <defaults>
</compile_context>

<pallas_src>
import jax
import jax.numpy as jnp
import numpy as np
from jax.experimental import pallas as pl
from jax.experimental.pallas import tpu as pltpu


# ----------------------------- kernels -----------------------------

def _film_kernel(v1_ref, ss_ref, out_ref):
    # q1_size == v1_size: no channel transform, pure element-wise FiLM.
    x = v1_ref[0].astype(jnp.float32)                       # (Dq, T_tile) f32
    ss = ss_ref[0]                                           # (Dq, 2) f32: [:,0]=scale [:,1]=shift
    out_ref[0] = (x * ss[:, 0:1] + ss[:, 1:2]).astype(out_ref.dtype)


def _transform_film_kernel(v1_ref, wv1_ref, ss_ref, out_ref):
    # v1_transform (Linear along the channel dim) fused with FiLM; bias folded into shift.
    w = wv1_ref[...]                                         # (Dq, D), bf16 or f32 (caller choice)
    x = v1_ref[0].astype(w.dtype)                            # (D, T_tile) — matmul dtype follows W
    v1t = jnp.dot(w, x, preferred_element_type=jnp.float32)  # (Dq, T_tile) f32 accumulate
    ss = ss_ref[0]                                           # (Dq, 2) f32
    out_ref[0] = (v1t * ss[:, 0:1] + ss[:, 1:2]).astype(out_ref.dtype)


# ----------------------------- wrapper -----------------------------

def _linear(x, w, b):
    # nn.Linear: weight (out, in), bias (out,)
    return jnp.dot(x.astype(jnp.float32), w.astype(jnp.float32).T) + b.astype(jnp.float32)


def adapt_forward(value1, value2, query1, query2, params, groups, mxu_bf16=False):
    """Pallas implementation of ADAPT.forward (linear variant).

    value1: (B, D, T)   value2: (B, v2) or None
    query1: (Bq, Dq)    query2: (Bq, q2) or None   (Bq == 1 or B)
    mxu_bf16: opt-in bf16 matmul for f32 callers (bf16 callers always use bf16 weights).
    """
    B, D, T = value1.shape
    Bq, Dq = query1.shape
    C = Dq // groups

    # ---- per-batch scalar path, hoisted out of the kernel (XLA fuses these tiny GEMMs) ----
    gam = _linear(query1, params["Wg"], params["bg"])               # (Bq, C)
    bet = _linear(query1, params["Wb"], params["bb"])               # (Bq, C)
    scale_g = gam + 1.0
    shift_g = bet
    if query2 is not None:
        shift_g = shift_g + _linear(query2, params["Wq2"], params["bq2"])
    scale_g = jnp.broadcast_to(scale_g, (B, C))                     # one-to-many broadcast
    shift_g = jnp.broadcast_to(shift_g, (B, C))
    if value2 is not None:
        shift_g = shift_g + _linear(value2, params["Wv2"], params["bv2"])   # (B, C)

    # group -> channel expansion: channel d uses group row d // groups (matches the
    # view(B, Dq//groups, groups, T) broadcast in the PyTorch forward).
    scale = jnp.repeat(scale_g, groups, axis=1)                     # (B, Dq) f32
    shift = jnp.repeat(shift_g, groups, axis=1)                     # (B, Dq) f32

    has_transform = (D != Dq)
    if has_transform:
        # (W v + b) * s + t  ==  (W v) * s + (b * s + t)
        shift = shift + params["bv1"].astype(jnp.float32)[None, :] * scale

    # pack scale/shift -> one small (B, Dq, 2) operand (single DMA per batch row)
    ss = jnp.stack([scale, shift], axis=-1).astype(jnp.float32)     # (B, Dq, 2)

    out_dtype = value1.dtype
    in_bytes = jnp.dtype(value1.dtype).itemsize
    out_bytes = jnp.dtype(out_dtype).itemsize

    if has_transform:
        if value1.dtype == jnp.bfloat16 or mxu_bf16:
            w_dtype = jnp.bfloat16          # bf16 MXU path (v6e/v7x throughput); f32 accumulate
        else:
            w_dtype = jnp.float32           # preserve weight precision for f32 callers
        wv1 = params["Wv1"].astype(w_dtype)
        w_vmem = Dq * D * jnp.dtype(w_dtype).itemsize          # single copy (Buffered(1))
    else:
        wv1 = None
        w_vmem = 0

    # ---- time tiling: lane-dense, VMEM-budget driven (multiple of 128, <= 1024) ----
    VMEM_BUDGET = 24 * 1024 * 1024          # conservative across v5e / v6e / v7x
    per_t_col = 2 * (D * in_bytes + Dq * out_bytes)             # double-buffered v1-in + out
    fixed = w_vmem + 2 * (Dq * 128 * 4)                         # Wv1 + lane-padded ss buffers
    avail = max(VMEM_BUDGET - fixed, per_t_col * 128)
    t_tile = min(1024, max(128, (avail // per_t_col) // 128 * 128))
    t_tile = min(t_tile, pl.cdiv(T, 128) * 128)
    T_pad = pl.cdiv(T, t_tile) * t_tile
    num_t = T_pad // t_tile

    if T_pad != T:
        # pad time so every output store is an unmasked full-lane vst; slice back afterwards
        value1 = jnp.pad(value1, ((0, 0), (0, 0), (0, T_pad - T)))

    vmem_need = fixed + per_t_col * t_tile
    vmem_limit = int(max(32 << 20, min(vmem_need + (8 << 20), 56 << 20)))

    # grid: time axis leads so the megacore parallel axis has work even when B == 1 (v7x)
    grid = (num_t, B)
    v1_spec = pl.BlockSpec((1, D, t_tile), lambda t, b: (b, 0, t))
    ss_spec = pl.BlockSpec((1, Dq, 2), lambda t, b: (b, 0, 0))
    out_spec = pl.BlockSpec((1, Dq, t_tile), lambda t, b: (b, 0, t))

    if has_transform:
        kernel = _transform_film_kernel
        args = (value1, wv1, ss)
        in_specs = [
            v1_spec,
            # grid-constant weight: single resident copy instead of a double buffer
            pl.BlockSpec((Dq, D), lambda t, b: (0, 0), pipeline_mode=pl.Buffered(1)),
            ss_spec,
        ]
    else:
        kernel = _film_kernel
        args = (value1, ss)
        in_specs = [v1_spec, ss_spec]

    out = pl.pallas_call(
        kernel,
        out_shape=jax.ShapeDtypeStruct((B, Dq, T_pad), out_dtype),
        grid_spec=pltpu.PrefetchScalarGridSpec(
            num_scalar_prefetch=0,
            grid=grid,
            in_specs=in_specs,
            out_specs=out_spec,
        ),
        compiler_params=pltpu.CompilerParams(
            dimension_semantics=("parallel", "parallel"),
            vmem_limit_bytes=vmem_limit,
        ),
    )(*args)

    if T_pad != T:
        out = out[:, :, :T]
    return out


# ----------------------------- reference -----------------------------

def adapt_reference(value1, value2, query1, query2, params, groups):
    """Pure-JAX mirror of the PyTorch forward (for verification)."""
    B, D, T = value1.shape
    Bv, Dv = query1.shape
    v1 = value1.astype(jnp.float32)
    if D != Dv:
        v1 = jnp.transpose(v1, (0, 2, 1)) @ params["Wv1"].T + params["bv1"]
        v1 = jnp.transpose(v1, (0, 2, 1))
    v1 = v1.reshape(B, Dv // groups, groups, -1)
    gammas = (query1 @ params["Wg"].T + params["bg"]).reshape(Bv, Dv // groups, 1, 1)
    betas = (query1 @ params["Wb"].T + params["bb"]).reshape(Bv, Dv // groups, 1, 1)
    out = v1 * (gammas + 1.0) + betas
    if query2 is not None:
        out = out + (query2 @ params["Wq2"].T + params["bq2"]).reshape(Bv, Dv // groups, 1, 1)
    if value2 is not None:
        out = out + (value2 @ params["Wv2"].T + params["bv2"]).reshape(B, Dv // groups, 1, 1)
    return out.reshape(B, Dv, -1)


# ----------------------------- test -----------------------------

if __name__ == "__main__":
    f32 = jnp.float32
    B, T = 2, 8
    v1_size, q1_size, q2_size, v2_size = 48, 32, 24, 16
    groups = 2
    C = q1_size // groups

    ks = iter(jax.random.split(jax.random.PRNGKey(0), 32))

    def rnd(shape, s=1.0):
        return s * jax.random.normal(next(ks), shape, f32)

    params = {
        "Wv1": rnd((q1_size, v1_size), 0.1), "bv1": rnd((q1_size,), 0.1),
        "Wg": rnd((C, q1_size), 0.1), "bg": rnd((C,), 0.1),
        "Wb": rnd((C, q1_size), 0.1), "bb": rnd((C,), 0.1),
        "Wv2": rnd((C, v2_size), 0.1), "bv2": rnd((C,), 0.1),
        "Wq2": rnd((C, q2_size), 0.1), "bq2": rnd((C,), 0.1),
    }

    query1 = rnd((1, q1_size))       # one-to-many adaptation (retrieval default)
    query2 = rnd((1, q2_size))
    value2 = rnd((B, v2_size))

    # case 1: v1_size != q1_size -> v1_transform + FiLM kernel, T padded 8 -> 128 (lane-dense)
    value1_a = rnd((B, v1_size, T))
    out_a = jax.block_until_ready(adapt_forward(value1_a, value2, query1, query2, params, groups))
    ref_a = adapt_reference(value1_a, value2, query1, query2, params, groups)
    np.testing.assert_allclose(np.asarray(out_a), np.asarray(ref_a), rtol=1e-4, atol=1e-4)

    # case 2: v1_size == q1_size -> no-transform, pure-FiLM kernel (no identity matmul)
    value1_b = rnd((B, q1_size, T))
    out_b = jax.block_until_ready(adapt_forward(value1_b, value2, query1, query2, params, groups))
    ref_b = adapt_reference(value1_b, value2, query1, query2, params, groups)
    np.testing.assert_allclose(np.asarray(out_b), np.asarray(ref_b), rtol=1e-4, atol=1e-4)

    # case 3: bf16 value1/Wv1/output (bf16 MXU on v6e/v7x), f32 accumulation in-kernel
    out_c = jax.block_until_ready(
        adapt_forward(value1_a.astype(jnp.bfloat16), value2, query1, query2, params, groups))
    np.testing.assert_allclose(np.asarray(out_c, dtype=np.float32), np.asarray(ref_a),
                               rtol=1e-1, atol=1e-1)

    # case 4: 128-aligned T (no padding path) + pairwise query (Bq == B), value2 only
    T2 = 256
    value1_d = rnd((B, v1_size, T2))
    query1_p = rnd((B, q1_size))
    out_d = jax.block_until_ready(adapt_forward(value1_d, value2, query1_p, None, params, groups))
    ref_d = adapt_reference(value1_d, value2, query1_p, None, params, groups)
    np.testing.assert_allclose(np.asarray(out_d), np.asarray(ref_d), rtol=1e-4, atol=1e-4)

    # case 5: non-aligned larger T (200 -> padded to 256), query2 only
    T3 = 200
    value1_e = rnd((B, q1_size, T3))
    out_e = jax.block_until_ready(adapt_forward(value1_e, None, query1, query2, params, groups))
    ref_e = adapt_reference(value1_e, None, query1, query2, params, groups)
    np.testing.assert_allclose(np.asarray(out_e), np.asarray(ref_e), rtol=1e-4, atol=1e-4)

    print("KERNEL_OK")
</pallas_src>

<mosaic_0001>
module attributes {stable_mosaic.version = 11 : i64} {
  func.func @_transform_film_kernel(%arg0: i32, %arg1: i32, %arg2: memref<1x48x128xf32, #tpu.memory_space<vmem>>, %arg3: memref<32x48xf32, #tpu.memory_space<vmem>>, %arg4: memref<1x32x2xf32, #tpu.memory_space<vmem>>, %arg5: memref<1x32x128xf32, #tpu.memory_space<vmem>>) attributes {dimension_semantics = [#tpu.dimension_semantics<parallel>, #tpu.dimension_semantics<parallel>], iteration_bounds = array<i64: 1, 2>, scalar_prefetch = 0 : i64, scratch_operands = 0 : i64, tpu.core_type = #tpu.core_type<tc>, window_params = [{transform_indices = @transform_0, window_bounds = array<i64: 1, 48, 128>}, {pipeline_mode = #tpu.pipeline_mode<synchronous>, transform_indices = @transform_1, window_bounds = array<i64: 32, 48>}, {transform_indices = @transform_2, window_bounds = array<i64: 1, 32, 2>}, {transform_indices = @transform_3, window_bounds = array<i64: 1, 32, 128>}]} {
    %c0 = arith.constant 0 : index
    %c0_0 = arith.constant 0 : index
    %0 = vector.load %arg3[%c0, %c0_0] : memref<32x48xf32, #tpu.memory_space<vmem>>, vector<32x48xf32>
    %c0_1 = arith.constant 0 : index
    %c0_2 = arith.constant 0 : index
    %c0_3 = arith.constant 0 : index
    %1 = vector.load %arg2[%c0_1, %c0_2, %c0_3] : memref<1x48x128xf32, #tpu.memory_space<vmem>>, vector<1x48x128xf32>
    %2 = vector.shape_cast %1 : vector<1x48x128xf32> to vector<48x128xf32>
    %cst = arith.constant dense<0.000000e+00> : vector<32x128xf32>
    %3 = tpu.matmul %0, %2, %cst {dimension_numbers = #tpu.dot_dimension_numbers<[1], [0], [0], [1], [0, 0, 1, 1], [], []>} : vector<32x48xf32>, vector<48x128xf32>, vector<32x128xf32> -> vector<32x128xf32>
    %c0_4 = arith.constant 0 : index
    %c0_5 = arith.constant 0 : index
    %c0_6 = arith.constant 0 : index
    %4 = vector.load %arg4[%c0_4, %c0_5, %c0_6] : memref<1x32x2xf32, #tpu.memory_space<vmem>>, vector<1x32x2xf32>
    %5 = vector.shape_cast %4 : vector<1x32x2xf32> to vector<32x2xf32>
    %6 = vector.extract_strided_slice %5 {offsets = [0, 0], sizes = [32, 1], strides = [1, 1]} : vector<32x2xf32> to vector<32x1xf32>
    %7 = vector.broadcast %6 : vector<32x1xf32> to vector<32x128xf32>
    %8 = arith.mulf %3, %7 : vector<32x128xf32>
    %9 = vector.extract_strided_slice %5 {offsets = [0, 1], sizes = [32, 1], strides = [1, 1]} : vector<32x2xf32> to vector<32x1xf32>
    %10 = vector.broadcast %9 : vector<32x1xf32> to vector<32x128xf32>
    %11 = arith.addf %8, %10 : vector<32x128xf32>
    %c0_7 = arith.constant 0 : index
    %c0_8 = arith.constant 0 : index
    %c0_9 = arith.constant 0 : index
    %12 = vector.load %arg5[%c0_7, %c0_8, %c0_9] : memref<1x32x128xf32, #tpu.memory_space<vmem>>, vector<1x32x128xf32>
    %13 = vector.shape_cast %12 : vector<1x32x128xf32> to vector<32x128xf32>
    %14 = vector.shape_cast %11 : vector<32x128xf32> to vector<1x32x128xf32>
    tpu.vector_store %arg5[%c0_7, %c0_8, %c0_9], %14 {strides = array<i32>} : memref<1x32x128xf32, #tpu.memory_space<vmem>>, vector<1x32x128xf32>,
    return
  }
  func.func @transform_0(%arg0: i32, %arg1: i32) -> (i32, i32, i32) {
    %c0_i32 = arith.constant 0 : i32
    %c0_i32_0 = arith.constant 0 : i32
    return %arg1, %c0_i32, %arg0 : i32, i32, i32
  }
  func.func @transform_1(%arg0: i32, %arg1: i32) -> (i32, i32) {
    %c0_i32 = arith.constant 0 : i32
    %c0_i32_0 = arith.constant 0 : i32
    %c0_i32_1 = arith.constant 0 : i32
    return %c0_i32, %c0_i32_0 : i32, i32
  }
  func.func @transform_2(%arg0: i32, %arg1: i32) -> (i32, i32, i32) {
    %c0_i32 = arith.constant 0 : i32
    %c0_i32_0 = arith.constant 0 : i32
    %c0_i32_1 = arith.constant 0 : i32
    return %arg1, %c0_i32, %c0_i32_0 : i32, i32, i32
  }
  func.func @transform_3(%arg0: i32, %arg1: i32) -> (i32, i32, i32) {
    %c0_i32 = arith.constant 0 : i32
    %c0_i32_0 = arith.constant 0 : i32
    return %arg1, %c0_i32, %arg0 : i32, i32, i32
  }
}

</mosaic_0001>

<bundles_post_ra>
// kernel: tpu_custom_call.1
= control target key start
LH: loop header
LB: loop body
LE: loop exit
PB: predicated region body
PF: predicated region fallthrough
CT: control target
= control target key end

     0   :  { %8 = vsyncpa [#allocation3], 0  ;;  %s978_s0 = inlined_call_operand.hbm [shape: f32[2,48,128], index: 0, kind: input, shape index: {}]   ;;  %s979_s1 = inlined_call_operand.vmem [shape: f32[32,48], index: 1, kind: input, shape index: {}]   ;;  %s980_s2 = inlined_call_operand.vmem [shape: f32[2,32,2], index: 2, kind: input, shape index: {}]   ;;  %s981_s3 = inlined_call_operand.hbm [shape: f32[2,32,128], index: 3, kind: output, shape index: {}]  }
   0x1   :  { %10 = vsyncpa [#allocation3 + $0x1], 0 }
   0x2   :  { %11 = vsyncpa [#allocation4], 0 }
   0x3   :  { %13 = vsyncpa [#allocation4 + $0x1], 0  ;;  %s781_s12 = smov 0   ;;  %s783_s13 = smov 0  }
   0x4   :  { %s785_s14 = smov 0   ;;  %s787_s15 = smov 0  }
   0x5   :  { %s789_s16 = smov 0   ;;  %s791_s17 = smov 0  }
   0x6 LB: > { %s498_s18 = sadd.s32 4294967295, %s751_s17   ;;  %s499_s19 = sadd.s32 4294967294, %s751_s17   ;;  %s751_s17 = sphi %s791_s17, %s19_s17   ;;  %s747_s16 = sphi %s789_s16, %s996_s16   ;;  %s743_s15 = sphi %s787_s15, %s995_s15   ;;  %s739_s14 = sphi %s785_s14, %s994_s14   ;;  %s735_s13 = sphi %s783_s13, %s993_s13   ;;  %s731_s12 = sphi %s781_s12, %s992_s12  }
   0x7   : > { %s28_s20 = sadd.s32 1, %s747_s16  ;;  %s40_s21 = sadd.s32 1, %s739_s14 }
   0x8   : > { %p29_p0 = scmp.ge.s32.totalorder %s28_s20, 2  ;;  %p47_p1 = scmp.ne.s32.totalorder %s739_s14, %s735_s13 }
   0x9   : > { %p48_p2 = scmp.eq.s32.totalorder %s751_s17, 0  ;;  %p53_p3 = scmp.ne.s32.totalorder %s735_s13, %s731_s12 }
   0xa   : > { %s998_s20 = smov (%p29_p0, %s28_s20), 0  ;;  %p54_p5 = scmp.eq.s32.totalorder %s498_s18, 0 }
   0xb   : > { %p822_p4 = por %p48_p2, %p47_p1  ;;  %s35_s23 = ssub.s32 %s747_s16, %s998_s20 }
   0xc   : > { %p126_p6 = scmp.eq.s32.totalorder %s498_s18, 1  ;;  %p38_p7 = scmp.eq.s32.totalorder %s35_s23, 0 }
   0xd   : > { %p828_p8 = por %p54_p5, %p53_p3  ;;  %p132_p10 = scmp.eq.s32.totalorder %s499_s19, 1 }
   0xe   : > { %p832_p9 = por %p126_p6, %p47_p1  ;;  %p579_p13 = scmp.lt.s32.totalorder %s751_s17, 2 }
   0xf   : > { %s837_s26 = scalar_select %p38_p7, %s739_s14, %s40_s21  }
  0x10   : > { %s985_s25 = scalar_select %p832_p9, 1, 0 }
  0x11   : > { %p839_p11 = por %p132_p10, %p53_p3  ;;  %s155_s28 = sand.u32 1, %s739_s14  }
  0x12   : > { %s564_s29 = smul.u32 48, %s155_s28  ;;  %p849_p0 = pnand %p579_p13, %p822_p4 }
  0x13   : > { %s986_s27 = scalar_select %p839_p11, 1, 0 }
  0x14   : > { %s565_s30 = smul.u32 768, %s747_s16  ;;  %s159_s8 = scalar_lea.vmem [#allocation2], %s564_s29 }
  0x15   : > { %s167_s9 = sshll.u32 %s159_s8, 4  ;;  %s861_s10 = scalar_lea.sflag [#allocation3], %s155_s28  ;;  %s858_s9 = int_to_ptr.vmem [resolvable:$true] %s167_s9 }
  0x16   : > { %s856_s7 = scalar_lea.hbm %s978_s0, %s565_s30  ;;  %p641_p3 = pneg %p849_p0 }
  0x17   : > { %s639_s11 = scalar_lea.hbm %s856_s7, 768  ;;  %s644_s21 = scalar_lea.hbm %s978_s0, 1536 }
  0x18   : > { %p640_p2 = scmp.ne.s32.totalorder %s856_s7, %s639_s11  ;;  %p645_p6 = scmp.lt.u32.totalorder %s856_s7, %s978_s0 }
  0x19   : > { %p646_p7 = scmp.lt.u32.totalorder %s644_s21, %s639_s11  ;;  %p648_p13 = scmp.lt.u32.totalorder %s639_s11, %s856_s7 }
  0x1a   : > { %p642_p4 = pnand %p641_p3, %p640_p2 }
  0x1b   : > { %p647_p10 = por %p646_p7, %p645_p6 }
  0x1c   : > { %p643_p5 = pneg %p642_p4 }
  0x1d   : > { %p649_p12 = por %p648_p13, %p647_p10 }
  0x1f   : > { %p650_p1 = pnand %p649_p12, %p643_p5 }
  0x21   : > { %653 = shalt.err (!%p650_p1)
}
  0x22   : > { %s654_s28 = scalar_lea.vmem %s858_s9, 768  ;;  %s753_s29 = smov [#allocation2]  }
  0x23   : > { %p655_p2 = scmp.ne.s32.totalorder %s858_s9, %s654_s28  ;;  %s659_s30 = sshll.u32 %s753_s29, 4  ;;  %s660_s30 = int_to_ptr.vmem [resolvable:$false] %s659_s30 }
  0x24   : > { %s661_s5 = scalar_lea.vmem %s660_s30, 1536  ;;  %p662_p9 = scmp.lt.s32.totalorder %s858_s9, %s660_s30 }
  0x25   : > { %p657_p4 = pnand %p655_p2, %p641_p3  ;;  %p663_p6 = scmp.lt.s32.totalorder %s661_s5, %s654_s28 }
  0x27   : > { %p658_p11 = pneg %p657_p4  ;;  %p664_p7 = por %p663_p6, %p662_p9 }
  0x29   : > { %p665_p10 = pnand %p664_p7, %p658_p11 }
  0x2b   : > { %668 = shalt.err (!%p665_p10)
}
  0x2c   : > { %s754_s6 = smov 128   ;;  %s755_s8 = smov 8  }
  0x2d   : > { %574 = dma.hbm_to_vmem [thread:$0]  (!%p849_p0), %s856_s7, 768, %s858_s9, %s861_s10, %s754_s6, %s754_s6, %s755_s8  }
  0x2e   : > { %p183_p12 = scmp.lt.s32.totalorder %s751_s17, 3  ;;  %p988_p1 = scmp.ge.s32.totalorder %s751_s17, 1 }
  0x30   : > { %p184_p3 = pnand %p988_p1, %p183_p12 }
  0x31   : > { %s893_s11 = sand.u32 (!%p184_p3), 1, %s735_s13  }
  0x32   : > { %187 = sbr.rel (%p184_p3) target bundleno = 305 (0x131), region = 32  ;;  %s190_s19 = scalar_lea.sflag (!%p184_p3), [#allocation3], %s893_s11 }
  0x33   : > { %s566_s18 = smul.u32 (!%p184_p3), 48, %s893_s11 }
  0x35   : > { %s193_s21 = scalar_lea.vmem (!%p184_p3), [#allocation2], %s566_s18 }
  0x39   : > { %722 = dma.done.wait (%p828_p8), %s190_s19, 768  }
  0x3a   : > { %724 = vsyncadd (%p828_p8), %s190_s19, 4294966528  ;;  %p221_p9 = scmp.lt.s32.totalorder %s743_s15, 1  ;;  %v756_v0 = vmov 0   ;;  %v230_v1 = vld [vmem:[%s193_s21] sm:$0xff]  ;;  %v231_v2 = vld [vmem:[%s193_s21 + $0x8] sm:$0xff]  ;;  %vm236_vm0 = vcmask 392192  }
  0x3b   : > { %636 = vset.pattern.permute.xlu1 %v756_v0  ;;  %635 = vset.pattern.permute.xlu0 %v756_v0  ;;  %v232_v3 = vld [vmem:[%s193_s21 + $0x10] sm:$0xff]  ;;  %v546_v4 = vpack.c.bf16 %v231_v2, %v230_v1  ;;  %v233_v5 = vld [vmem:[%s193_s21 + $0x18] sm:$0xff]  ;;  %v234_v7 = vld [vmem:[%s193_s21 + $0x20] sm:$0xff]  ;;  %v757_v18 = vmov 1   ;;  %s504_s18 = sshll.u32 %s893_s11, 5  ;;  %s387_s10 = scalar_lea.sflag [#allocation4], %s893_s11 }
  0x3c   : > { %s222_s4 = scalar_select %p221_p9, %s743_s15, 1  ;;  %v550_v6 = vpack.c.bf16 %v233_v5, %v232_v3  ;;  %v235_v8 = vld [vmem:[%s193_s21 + $0x28] sm:$0xff]  ;;  %v226_v9 = vld [vmem:[%s979_s1] sm:$0xff]  ;;  %v228_v10 = vld [vmem:[%s979_s1 + $0x10] sm:$0xff] }
  0x3d   : > { %547 = vmatprep.subr.bf16.mxu0 %v546_v4  ;;  %558 = vmatprep.subr.bf16.mxu1 %v546_v4  ;;  %v554_v13 = vpack.c.bf16 %v235_v8, %v234_v7  ;;  %v227_v16 = vld [vmem:[%s979_s1 + $0x8] sm:$0xff]  ;;  %v229_v17 = vld [vmem:[%s979_s1 + $0x18] sm:$0xff]  ;;  %s220_s19 = scalar_lea.vmem [#allocation5], %s504_s18  ;;  %p989_p11 = scmp.ne.s32.totalorder %s985_s25, 0 }
  0x3e   : > { %s516_s7 = sshll.u32 %s222_s4, 5  ;;  %549 = vmatpush3.bf16.msra.mxu0 %v546_v4  ;;  %561 = vmatpush3.bf16.msra.mxu1 %v546_v4  ;;  %s401_s21 = sshll.u32 %s220_s19, 4  ;;  %s924_s21 = int_to_ptr.vmem [resolvable:$true] %s401_s21 }
  0x3f   : > { %s225_s22 = scalar_lea.vmem %s980_s2, %s516_s7  ;;  %551 = vmatprep.subr.bf16.mxu0 %v550_v6  ;;  %559 = vmatprep.subr.bf16.mxu1 %v550_v6  ;;  %s517_s4 = sshll.u32 %s743_s15, 9 }
  0x40   : > { %v336_v11 = vld [vmem:[%s225_s22 + $0x10] sm:$0xff]  ;;  %v334_v12 = vld [vmem:[%s225_s22] sm:$0xff]  ;;  %540 = vmatprep.mubr.msk.f32.mxu0 %vm236_vm0, %v226_v9  ;;  %543 = vmatprep.mubr.msk.f32.mxu1 %vm236_vm0, %v228_v10  ;;  %v337_v14 = vld [vmem:[%s225_s22 + $0x18] sm:$0xff]  ;;  %s929_s15 = scalar_lea.hbm %s981_s3, %s517_s4  ;;  %s758_s24 = smov [#allocation5]  }
  0x41   : > { %350 = vperm.xlu1 %636, %v336_v11   ;;  %340 = vperm.xlu0 %635, %v334_v12   ;;  %v335_v15 = vld [vmem:[%s225_s22 + $0x8] sm:$0xff]  ;;  %s669_s22 = scalar_lea.vmem %s924_s21, 512  ;;  %s673_s23 = sshll.u32 %s758_s24, 4  ;;  %s674_s23 = int_to_ptr.vmem [resolvable:$false] %s673_s23 }
  0x42   : > { %553 = vmatpush3.bf16.msra.mxu0 %v550_v6  ;;  %562 = vmatpush3.bf16.msra.mxu1 %v550_v6  ;;  %p670_p8 = scmp.ne.s32.totalorder %s924_s21, %s669_s22  ;;  %s675_s28 = scalar_lea.vmem %s674_s23, 1024 }
  0x43   : > { %555 = vmatprep.subr.bf16.mxu0 %v554_v13  ;;  %560 = vmatprep.subr.bf16.mxu1 %v554_v13  ;;  %p676_p13 = scmp.lt.s32.totalorder %s924_s21, %s674_s23  ;;  %p677_p2 = scmp.lt.s32.totalorder %s675_s28, %s669_s22 }
  0x44   : > { %p671_p0 = pnand %p670_p8, %p989_p11 }
  0x45   : > { %355 = vperm.xlu1 %636, %v337_v14   ;;  %345 = vperm.xlu0 %635, %v335_v15   ;;  %p678_p4 = por %p677_p2, %p676_p13 }
  0x46   : > { %557 = vmatpush3.bf16.msra.mxu0 %v554_v13  ;;  %563 = vmatpush3.bf16.msra.mxu1 %v554_v13  ;;  %p672_p5 = pneg %p671_p0 }
  0x48   : > { %p679_p6 = pnand %p678_p4, %p672_p5 }
  0x49   : > { %541 = vmatmul.mubr.msk.f32.vlgmr.msra.gmra.mrb[0].mxu0 %vm236_vm0, %v227_v16  ;;  %544 = vmatmul.mubr.msk.f32.vlgmr.msra.gmra.mrb[0].mxu1 %vm236_vm0, %v229_v17 }
  0x4a   : > { %638 = vset.pattern.permute.xlu1 %v757_v18  ;;  %637 = vset.pattern.permute.xlu0 %v757_v18 }
  0x4b   : > { %367 = vperm.xlu1 %638, %v335_v15   ;;  %363 = vperm.xlu0 %637, %v334_v12  }
  0x4f   : > { %371 = vperm.xlu1 %638, %v336_v11   ;;  %375 = vperm.xlu0 %637, %v337_v14  }
  0xc0   : > { %v341_v19 = vpop.permute.xlu0 %340  ;;  %v351_v20 = vpop.permute.xlu1 %350 }
  0xc4   : > { %v346_v21 = vpop.permute.xlu0 %345  ;;  %v356_v22 = vpop.permute.xlu1 %355 }
  0xca   : > { %v364_v23 = vpop.permute.xlu0 %363  ;;  %v368_v24 = vpop.permute.xlu1 %367 }
  0xce   : > { %v376_v31 = vpop.permute.xlu0 %375  ;;  %v372_v34 = vpop.permute.xlu1 %371 }
 0x11c   : > { %v542_v25 = vpop.f32.mrb[0].mxu0  ;;  %v545_v26 = vpop.f32.mrb[0].mxu1 }
 0x11d   : > { %v359_v27 = vmul.f32 %v542_v25, %v346_v21  ;;  %v361_v28 = vmul.f32 %v545_v26, %v356_v22  ;;  %v315_v29 = vpop.f32.mrb[1].mxu0  ;;  %v325_v30 = vpop.f32.mrb[1].mxu1 }
 0x11e   : > { %v358_v32 = vmul.f32 %v341_v19, %v315_v29  ;;  %v360_v33 = vmul.f32 %v351_v20, %v325_v30 }
 0x11f   : > { %v379_v35 = vadd.f32 %v368_v24, %v359_v27  ;;  %v381_v36 = vadd.f32 %v376_v31, %v361_v28 }
 0x120   : > { %v378_v37 = vadd.f32 %v364_v23, %v358_v32  ;;  %v380_v38 = vadd.f32 %v372_v34, %v360_v33 }
 0x121   : > { %383 = vst [vmem:[%s220_s19 + $0x8] sm:$0xff] %v379_v35  ;;  %385 = vst [vmem:[%s220_s19 + $0x18] sm:$0xff] %v381_v36 }
 0x122   : > { %382 = vst [vmem:[%s220_s19] sm:$0xff] %v378_v37  ;;  %384 = vst [vmem:[%s220_s19 + $0x10] sm:$0xff] %v380_v38 }
 0x123   : > { %682 = shalt.err (!%p679_p6)
}
 0x124   : > { %s683_s29 = scalar_lea.hbm %s929_s15, 512  ;;  %s687_s6 = scalar_lea.hbm %s981_s3, 1024 }
 0x125   : > { %p684_p7 = scmp.ne.s32.totalorder %s929_s15, %s683_s29  ;;  %p688_p1 = scmp.lt.u32.totalorder %s929_s15, %s981_s3 }
 0x126   : > { %p689_p3 = scmp.lt.u32.totalorder %s687_s6, %s683_s29  ;;  %p691_p8 = scmp.lt.u32.totalorder %s683_s29, %s929_s15 }
 0x127   : > { %p685_p10 = pnand %p684_p7, %p989_p11 }
 0x128   : > { %p690_p9 = por %p689_p3, %p688_p1 }
 0x129   : > { %p686_p12 = pneg %p685_p10 }
 0x12a   : > { %p692_p0 = por %p691_p8, %p690_p9 }
 0x12c   : > { %p693_p5 = pnand %p692_p0, %p686_p12 }
 0x12e   : > { %696 = shalt.err (!%p693_p5)
}
 0x12f   : > { %s759_s19 = smov 128   ;;  %s760_s4 = smov 8  }
 0x130   : > { %569 = dma.vmem_to_hbm [thread:$0]  (%p989_p11), %s924_s21, 512, %s929_s15, %s387_s10, %s759_s19, %s759_s19, %s760_s4  }
 0x131 PF: > { %s416_s7 = sand.u32 1, %s731_s12   ;;  %p990_p13 = scmp.ne.s32.totalorder %s986_s27, 0 }
 0x132   : > { %p991_p2 = scmp.ge.s32.totalorder %s751_s17, 2  ;;  %s417_s9 = scalar_lea.sflag [#allocation4], %s416_s7 }
 0x134   : > { %p576_p4 = pnand %p991_p2, %p990_p13 }
 0x136   : > { %726 = dma.done.wait (!%p576_p4), %s417_s9, 512  }
 0x137   : > { %728 = vsyncadd (!%p576_p4), %s417_s9, 4294966784  ;;  %s19_s17 = sadd.s32 1, %s751_s17   ;;  %s992_s12 = smov %s735_s13 }
 0x138   : > { %p16_p6 = scmp.ge.s32.totalorder %s19_s17, 4   ;;  %s993_s13 = smov %s739_s14 }
 0x139   : > { %s994_s14 = smov %s837_s26  ;;  %s995_s15 = smov %s747_s16 }
 0x13a   : > { %s996_s16 = smov %s998_s20  ;;  %18 = sbr.rel (!%p16_p6) target bundleno = 6 (0x6), region = 80 }
 0x141   :  { %422 = vsyncpa [#allocation3], 1 }
 0x142   :  { %424 = vsyncpa [#allocation3 + $0x1], 1 }
 0x143   :  { %425 = vsyncpa [#allocation4], 1 }
 0x144   :  { %427 = vsyncpa [#allocation4 + $0x1], 1 }

</bundles_post_ra>
